<compile_context>
chip_gen: v7x
topology: tpu7x:2x2x1
jax: 0.10.0
libtpu: 0.0.40
codegen_flags: <defaults>
</compile_context>

<pallas_src>
import jax
import jax.numpy as jnp
import numpy as np
from jax.experimental import pallas as pl
from jax.experimental.pallas import tpu as pltpu


def _round_up(x, k):
    return ((x + k - 1) // k) * k


def _choose_tile_n(n, m, d, h, z_itemsize, budget_bytes=40 * 1024 * 1024):
    """Largest batch tile whose working set fits a conservative VMEM budget.

    The budget is sized for v7x (64 MiB physical VMEM); on v5e/v6e (128 MiB)
    the same tile is at worst equal (capped at N), so one heuristic covers
    all generations.
    """
    mp = _round_up(m, 128)
    per_row = (
        2 * m * d * z_itemsize      # double-buffered z block
        + m * h * 4                 # f32 hidden activation tanh(z @ W1 + b1)
        + 2 * m * d * 4             # f32 temporaries around the matmuls
        + 2 * mp * 4                # double-buffered lane-padded beta row
        + 2 * d * 4                 # double-buffered out row
    )
    tn = max(1, int(budget_bytes // max(per_row, 1)))
    if tn >= n:
        return n
    return max(8, (tn // 8) * 8)    # keep sublane-aligned tiles when N is tiled


def agg_attention_kernel(z_ref, w1_ref, b1_ref, w2r_ref, out_ref, beta_ref):
    z = z_ref[...]                         # (TN, M, D), native dtype (bf16 stays bf16)
    tn, m, d = z.shape
    mp = beta_ref.shape[-1]                # lane-padded item count (multiple of 128)

    # ---- projection MLP: tanh(z @ W1 + b1), then H-reduce against w2 row ----
    # Leading-dim collapse keeps the lane dim (D) intact -> no relayout.
    zf = z.reshape(tn * m, d)
    h = jnp.tanh(
        jnp.dot(zf, w1_ref[...], preferred_element_type=jnp.float32)
        + b1_ref[0, :]                     # (H,) broadcast, added once
    )                                      # (TN*M, H) f32
    # (H,1) matvec -> VPU multiply + lane reduce: MXU stays free and the
    # width-1 MXU output / reshape relayout is gone.
    w = jnp.sum(h.reshape(tn, m, -1) * w2r_ref[0, :], axis=-1)   # (TN, M) f32

    # ---- softmax over the item axis (dim=1 of the original (N, M, D)) -------
    w_max = jnp.max(w, axis=1, keepdims=True)
    e = jnp.exp(w - w_max)
    beta = e / jnp.sum(e, axis=1, keepdims=True)                 # (TN, M) f32

    # ---- weighted aggregation: batched contraction over M on the MXU --------
    out = jnp.einsum(
        "nkm,nmd->nkd", beta[:, None, :], z,
        preferred_element_type=jnp.float32,
    )[:, 0, :]                                                   # (TN, D) f32
    out_ref[...] = out.astype(out_ref.dtype)

    # Lane-dense beta store: write the full (TN, MP) tile (unmasked vst);
    # the wrapper slices back to (N, M).
    if mp > m:
        beta = jnp.concatenate(
            [beta, jnp.zeros((tn, mp - m), jnp.float32)], axis=1
        )
    beta_ref[...] = beta.astype(beta_ref.dtype)


def agg_attention(z, w1, b1, w2):
    """z: (N, M, D); w1: (D, H); b1: (1, H); w2: (H, 1) -> ((N, D), (N, M))."""
    N, M, D = z.shape
    H = w1.shape[1]
    MP = _round_up(M, 128)
    TN = _choose_tile_n(N, M, D, H, jnp.dtype(z.dtype).itemsize)
    grid = (pl.cdiv(N, TN),)

    # (H, 1) -> (1, H) row so the kernel can do a VPU mul + lane reduce.
    w2_row = w2.reshape(1, H)

    out, beta_pad = pl.pallas_call(
        agg_attention_kernel,
        out_shape=(
            jax.ShapeDtypeStruct((N, D), z.dtype),
            jax.ShapeDtypeStruct((N, MP), jnp.float32),   # beta always f32
        ),
        grid=grid,
        in_specs=[
            pl.BlockSpec((TN, M, D), lambda i: (i, 0, 0)),   # batch-tiled z
            pl.BlockSpec((D, H), lambda i: (0, 0)),          # weights: resident full blocks
            pl.BlockSpec((1, H), lambda i: (0, 0)),
            pl.BlockSpec((1, H), lambda i: (0, 0)),
        ],
        out_specs=(
            pl.BlockSpec((TN, D), lambda i: (i, 0)),
            pl.BlockSpec((TN, MP), lambda i: (i, 0)),
        ),
        compiler_params=pltpu.CompilerParams(
            dimension_semantics=("parallel",),        # megacore-shard the batch axis
            vmem_limit_bytes=48 * 1024 * 1024,        # safe on v7x, ample on v5e/v6e
        ),
    )(z, w1, b1, w2_row)
    return out, beta_pad[:, :M]


def agg_attention_ref(z, w1, b1, w2):
    """Pure-JAX reference mirroring the PyTorch forward."""
    h = jnp.tanh(jnp.einsum("nmd,dh->nmh", z, w1) + b1[0])
    w = jnp.einsum("nmh,ho->nmo", h, w2)[..., 0]         # (N, M)
    beta = jax.nn.softmax(w, axis=1)
    out = jnp.sum(beta[:, :, None] * z, axis=1)
    return out, beta


if __name__ == "__main__":
    # Small, deterministic setup consistent with AggAttention(in_size=32).
    N, M, D, H = 2, 8, 32, 128   # batch, items, in_size, hidden_size (default 128)

    key = jax.random.PRNGKey(0)
    kz, kw1, kb1, kw2 = jax.random.split(key, 4)

    z = jax.random.normal(kz, (N, M, D), dtype=jnp.float32)
    # Deterministic "Linear"-style init (uniform in +/- 1/sqrt(fan_in)).
    w1 = jax.random.uniform(kw1, (D, H), jnp.float32, -1.0 / np.sqrt(D), 1.0 / np.sqrt(D))
    b1 = jax.random.uniform(kb1, (1, H), jnp.float32, -1.0 / np.sqrt(D), 1.0 / np.sqrt(D))
    w2 = jax.random.uniform(kw2, (H, 1), jnp.float32, -1.0 / np.sqrt(H), 1.0 / np.sqrt(H))

    out, beta = jax.block_until_ready(agg_attention(z, w1, b1, w2))

    out_ref, beta_ref = agg_attention_ref(z, w1, b1, w2)
    assert out.shape == (N, D) and beta.shape == (N, M)
    np.testing.assert_allclose(np.asarray(out), np.asarray(out_ref), rtol=1e-5, atol=1e-5)
    np.testing.assert_allclose(np.asarray(beta), np.asarray(beta_ref), rtol=1e-5, atol=1e-5)

    print("KERNEL_OK")
</pallas_src>

<mosaic_0001>
module attributes {stable_mosaic.version = 11 : i64} {
  func.func @agg_attention_kernel(%arg0: i32, %arg1: memref<2x8x32xf32, #tpu.memory_space<vmem>>, %arg2: memref<32x128xf32, #tpu.memory_space<vmem>>, %arg3: memref<1x128xf32, #tpu.memory_space<vmem>>, %arg4: memref<1x128xf32, #tpu.memory_space<vmem>>, %arg5: memref<2x32xf32, #tpu.memory_space<vmem>>, %arg6: memref<2x128xf32, #tpu.memory_space<vmem>>) attributes {dimension_semantics = [#tpu.dimension_semantics<parallel>], iteration_bounds = array<i64: 1>, scalar_prefetch = 0 : i64, scratch_operands = 0 : i64, tpu.core_type = #tpu.core_type<tc>, window_params = [{transform_indices = @transform_0, window_bounds = array<i64: 2, 8, 32>}, {pipeline_mode = #tpu.pipeline_mode<synchronous>, transform_indices = @transform_1, window_bounds = array<i64: 32, 128>}, {pipeline_mode = #tpu.pipeline_mode<synchronous>, transform_indices = @transform_2, window_bounds = array<i64: 1, 128>}, {pipeline_mode = #tpu.pipeline_mode<synchronous>, transform_indices = @transform_3, window_bounds = array<i64: 1, 128>}, {transform_indices = @transform_4, window_bounds = array<i64: 2, 32>}, {transform_indices = @transform_5, window_bounds = array<i64: 2, 128>}]} {
    %c0 = arith.constant 0 : index
    %c0_0 = arith.constant 0 : index
    %c0_1 = arith.constant 0 : index
    %0 = vector.load %arg1[%c0, %c0_0, %c0_1] : memref<2x8x32xf32, #tpu.memory_space<vmem>>, vector<2x8x32xf32>
    %1 = vector.shape_cast %0 : vector<2x8x32xf32> to vector<16x32xf32>
    %c0_2 = arith.constant 0 : index
    %c0_3 = arith.constant 0 : index
    %2 = vector.load %arg2[%c0_2, %c0_3] : memref<32x128xf32, #tpu.memory_space<vmem>>, vector<32x128xf32>
    %cst = arith.constant dense<0.000000e+00> : vector<16x128xf32>
    %3 = tpu.matmul %1, %2, %cst {dimension_numbers = #tpu.dot_dimension_numbers<[1], [0], [0], [1], [0, 0, 1, 1], [], []>} : vector<16x32xf32>, vector<32x128xf32>, vector<16x128xf32> -> vector<16x128xf32>
    %c0_4 = arith.constant 0 : index
    %c0_5 = arith.constant 0 : index
    %4 = vector.load %arg3[%c0_4, %c0_5] : memref<1x128xf32, #tpu.memory_space<vmem>>, vector<1x128xf32>
    %5 = vector.shape_cast %4 : vector<1x128xf32> to vector<128xf32>
    %6 = vector.shape_cast %5 : vector<128xf32> to vector<1x128xf32>
    %7 = vector.broadcast %6 : vector<1x128xf32> to vector<16x128xf32>
    %8 = arith.addf %3, %7 : vector<16x128xf32>
    %9 = math.tanh %8 : vector<16x128xf32>
    %10 = vector.shape_cast %9 : vector<16x128xf32> to vector<2x8x128xf32>
    %c0_6 = arith.constant 0 : index
    %c0_7 = arith.constant 0 : index
    %11 = vector.load %arg4[%c0_6, %c0_7] : memref<1x128xf32, #tpu.memory_space<vmem>>, vector<1x128xf32>
    %12 = vector.shape_cast %11 : vector<1x128xf32> to vector<128xf32>
    %13 = vector.shape_cast %12 : vector<128xf32> to vector<1x1x128xf32>
    %14 = vector.broadcast %13 : vector<1x1x128xf32> to vector<2x8x128xf32>
    %15 = arith.mulf %10, %14 : vector<2x8x128xf32>
    %cst_8 = arith.constant dense<0.000000e+00> : vector<2x8xf32>
    %16 = vector.multi_reduction <add>, %15, %cst_8 [2] : vector<2x8x128xf32> to vector<2x8xf32>
    %cst_9 = arith.constant dense<0xFF800000> : vector<2xf32>
    %17 = vector.multi_reduction <maximumf>, %16, %cst_9 [1] : vector<2x8xf32> to vector<2xf32>
    %18 = vector.shape_cast %17 : vector<2xf32> to vector<2x1xf32>
    %19 = vector.broadcast %18 : vector<2x1xf32> to vector<2x8xf32>
    %20 = arith.subf %16, %19 : vector<2x8xf32>
    %21 = math.exp %20 : vector<2x8xf32>
    %cst_10 = arith.constant dense<0.000000e+00> : vector<2xf32>
    %22 = vector.multi_reduction <add>, %21, %cst_10 [1] : vector<2x8xf32> to vector<2xf32>
    %23 = vector.shape_cast %22 : vector<2xf32> to vector<2x1xf32>
    %24 = vector.broadcast %23 : vector<2x1xf32> to vector<2x8xf32>
    %25 = arith.divf %21, %24 : vector<2x8xf32>
    %26 = vector.shape_cast %25 : vector<2x8xf32> to vector<2x1x8xf32>
    "tpu.trace_start"() <{level = 10 : i32, message = "nkm,nmd->nkd"}> : () -> ()
    %cst_11 = arith.constant dense<0.000000e+00> : vector<2x1x32xf32>
    %27 = tpu.matmul %26, %0, %cst_11 {dimension_numbers = #tpu.dot_dimension_numbers<[2], [1], [1], [2], [0, 0, 0, 1, 1, 2], [0], [0]>} : vector<2x1x8xf32>, vector<2x8x32xf32>, vector<2x1x32xf32> -> vector<2x1x32xf32>
    "tpu.trace_stop"() : () -> ()
    %28 = vector.shape_cast %27 : vector<2x1x32xf32> to vector<2x32xf32>
    %c0_12 = arith.constant 0 : index
    %c0_13 = arith.constant 0 : index
    %29 = vector.load %arg5[%c0_12, %c0_13] : memref<2x32xf32, #tpu.memory_space<vmem>>, vector<2x32xf32>
    tpu.vector_store %arg5[%c0_12, %c0_13], %28 {strides = array<i32>} : memref<2x32xf32, #tpu.memory_space<vmem>>, vector<2x32xf32>,
    %cst_14 = arith.constant 0.000000e+00 : f32
    %30 = vector.broadcast %cst_14 : f32 to vector<2x120xf32>
    %31 = tpu.concatenate %25, %30 in 1 : vector<2x8xf32>, vector<2x120xf32> -> vector<2x128xf32>
    %c0_15 = arith.constant 0 : index
    %c0_16 = arith.constant 0 : index
    %32 = vector.load %arg6[%c0_15, %c0_16] : memref<2x128xf32, #tpu.memory_space<vmem>>, vector<2x128xf32>
    tpu.vector_store %arg6[%c0_15, %c0_16], %31 {strides = array<i32>} : memref<2x128xf32, #tpu.memory_space<vmem>>, vector<2x128xf32>,
    return
  }
  func.func @transform_0(%arg0: i32) -> (i32, i32, i32) {
    %c0_i32 = arith.constant 0 : i32
    %c0_i32_0 = arith.constant 0 : i32
    %c0_i32_1 = arith.constant 0 : i32
    return %arg0, %c0_i32, %c0_i32_0 : i32, i32, i32
  }
  func.func @transform_1(%arg0: i32) -> (i32, i32) {
    %c0_i32 = arith.constant 0 : i32
    %c0_i32_0 = arith.constant 0 : i32
    %c0_i32_1 = arith.constant 0 : i32
    return %c0_i32, %c0_i32_0 : i32, i32
  }
  func.func @transform_2(%arg0: i32) -> (i32, i32) {
    %c0_i32 = arith.constant 0 : i32
    %c0_i32_0 = arith.constant 0 : i32
    %c0_i32_1 = arith.constant 0 : i32
    return %c0_i32, %c0_i32_0 : i32, i32
  }
  func.func @transform_3(%arg0: i32) -> (i32, i32) {
    %c0_i32 = arith.constant 0 : i32
    %c0_i32_0 = arith.constant 0 : i32
    %c0_i32_1 = arith.constant 0 : i32
    return %c0_i32, %c0_i32_0 : i32, i32
  }
  func.func @transform_4(%arg0: i32) -> (i32, i32) {
    %c0_i32 = arith.constant 0 : i32
    %c0_i32_0 = arith.constant 0 : i32
    return %arg0, %c0_i32 : i32, i32
  }
  func.func @transform_5(%arg0: i32) -> (i32, i32) {
    %c0_i32 = arith.constant 0 : i32
    %c0_i32_0 = arith.constant 0 : i32
    return %arg0, %c0_i32 : i32, i32
  }
}

</mosaic_0001>

<bundles_post_ra>
// kernel: tpu_custom_call.1
= control target key start
LH: loop header
LB: loop body
LE: loop exit
PB: predicated region body
PF: predicated region fallthrough
CT: control target
= control target key end

     0   :  { %11 = vsyncpa [#allocation3], 0  ;;  %s700_s0 = inlined_call_operand.hbm [shape: f32[2,8,32], index: 0, kind: input, shape index: {}]   ;;  %s701_s1 = inlined_call_operand.hbm [shape: f32[32,128], index: 1, kind: input, shape index: {}]   ;;  %s702_s2 = inlined_call_operand.vmem [shape: f32[1,128], index: 2, kind: input, shape index: {}]   ;;  %s703_s3 = inlined_call_operand.vmem [shape: f32[1,128], index: 3, kind: input, shape index: {}]   ;;  %s704_s4 = inlined_call_operand.hbm [shape: f32[2,32], index: 4, kind: output, shape index: {0}]   ;;  %s705_s5 = inlined_call_operand.hbm [shape: f32[2,128], index: 5, kind: output, shape index: {1}]  }
   0x1   :  { %12 = vsyncpa [#allocation6], 0 }
   0x2   :  { %13 = vsyncpa [#allocation4], 0 }
   0x3   :  { %14 = vsyncpa [#allocation9], 0  ;;  %s597_s18 = smov [#allocation2]   ;;  %s501_s22 = scalar_lea.hbm %s700_s0, 256 }
   0x4   :  { %s20_s19 = sshll.u32 %s597_s18, 4  ;;  %p502_p0 = scmp.ne.s32.totalorder %s700_s0, %s501_s22  ;;  %s21_s19 = int_to_ptr.vmem [resolvable:$true] %s20_s19 }
   0x5   :  { %p505_p1 = scmp.lt.u32.totalorder %s501_s22, %s700_s0 }
   0x7   :  { %p507_p2 = pnand %p505_p1, %p502_p0 }
   0x9   :  { %510 = shalt.err (!%p507_p2)
}
   0xa   :  { %s511_s27 = scalar_lea.vmem %s21_s19, 256  ;;  %p516_p4 = scmp.lt.s32.totalorder %s21_s19, %s21_s19 }
   0xb   :  { %p512_p3 = scmp.ne.s32.totalorder %s21_s19, %s511_s27  ;;  %p517_p5 = scmp.lt.s32.totalorder %s511_s27, %s511_s27 }
   0xd   :  { %p518_p6 = por %p517_p5, %p516_p4 }
   0xf   :  { %p519_p7 = pnand %p518_p6, %p512_p3 }
  0x11   :  { %522 = shalt.err (!%p519_p7)
}
  0x12   :  { %s598_s28 = smov 128   ;;  %s599_s29 = smov 8  }
  0x13   :  { %26 = dma.hbm_to_vmem [thread:$0]  %s700_s0, 256, %s21_s19, [#allocation3], %s598_s28, %s598_s28, %s599_s29  }
  0x14   :  { %s600_s7 = smov [#allocation5]   ;;  %s523_s11 = scalar_lea.hbm %s701_s1, 512 }
  0x15   :  { %s32_s8 = sshll.u32 %s600_s7, 4  ;;  %p524_p8 = scmp.ne.s32.totalorder %s701_s1, %s523_s11  ;;  %s33_s8 = int_to_ptr.vmem [resolvable:$true] %s32_s8 }
  0x16   :  { %p527_p9 = scmp.lt.u32.totalorder %s523_s11, %s701_s1 }
  0x18   :  { %p529_p10 = pnand %p527_p9, %p524_p8 }
  0x1a   :  { %532 = shalt.err (!%p529_p10)
}
  0x1b   :  { %s533_s16 = scalar_lea.vmem %s33_s8, 512  ;;  %p538_p12 = scmp.lt.s32.totalorder %s33_s8, %s33_s8 }
  0x1c   :  { %p534_p11 = scmp.ne.s32.totalorder %s33_s8, %s533_s16  ;;  %p539_p13 = scmp.lt.s32.totalorder %s533_s16, %s533_s16 }
  0x1e   :  { %p540_p0 = por %p539_p13, %p538_p12 }
  0x20   :  { %p541_p1 = pnand %p540_p0, %p534_p11 }
  0x22   :  { %544 = shalt.err (!%p541_p1)
}
  0x23   :  { %38 = dma.hbm_to_vmem [thread:$0]  %s701_s1, 512, %s33_s8, [#allocation6], %s598_s28, %s598_s28, %s599_s29  }
  0x24   :  { %589 = dma.done.wait [#allocation3], 256  }
  0x25   :  { %590 = vsyncadd [#allocation3], 4294967040 }
  0x26   :  { %591 = dma.done.wait [#allocation6], 512  }
  0x27   :  { %592 = vsyncadd [#allocation6], 4294966784  ;;  %vm62_vm0 = vcmask 261120   ;;  %v51_v0 = vld [vmem:[#allocation5] sm:$0xff]  ;;  %v52_v1 = vld [vmem:[#allocation5 + $0x8] sm:$0xff]  ;;  %v161_v18 = vlaneseq  ;;  %vm171_vm1 = vcmask 1041409  }
  0x28   :  { %v53_v2 = vld [vmem:[#allocation5 + $0x10] sm:$0xff]  ;;  %v470_v3 = vpack.c.bf16 %v52_v1, %v51_v0  ;;  %v54_v4 = vld [vmem:[#allocation5 + $0x18] sm:$0xff]  ;;  %vm174_vm2 = vcmask 58368   ;;  %v601_v28 = vmov 0   ;;  %v602_v46 = vmov 0.0  }
  0x29   :  { %v49_v5 = vld [vmem:[#allocation2] sm:$0xff]  ;;  %v474_v6 = vpack.c.bf16 %v54_v4, %v53_v2  ;;  %v660_v7 = vld [vmem:[#allocation2 + $0x8] sm:$0xff]  ;;  %v162_v19 = vand.u32 127, %v161_v18  ;;  %v164_v20 = vshrl.u32 %v161_v18, 7  ;;  %488 = vset.pattern.permute.xlu0 %v601_v28  ;;  %487 = vset.pattern.permute.xlu1 %v601_v28  ;;  %vm603_vm3 = vmmov 0  }
  0x2a   :  { %457 = vmatprep.mubr.msk.f32.mxu0 %vm62_vm0, %v49_v5  ;;  %471 = vmatprep.subr.bf16.mxu0 %v470_v3  ;;  %v433_v8 = vld [vmem:[%s702_s2] ss:$0 sm:$0xff]  ;;  %vm239_vm4 = vcmask 64512   ;;  %s604_s2 = smov [#allocation8]  }
  0x2b   :  { %473 = vmatpush3.bf16.msra.mxu0 %v470_v3  ;;  %v436_v13 = vld [vmem:[%s703_s3] ss:$0 sm:$0xff]  ;;  %v165_v22 = vsub.s32 %v162_v19, %v164_v20  ;;  %v181_v29 = vsub.s32 0, %v164_v20  ;;  %v185_v30 = vsub.s32 1, %v164_v20  ;;  %460 = vmatprep.subr.mxu1 %v602_v46  ;;  %s419_s3 = sshll.u32 %s604_s2, 4  ;;  %s420_s3 = int_to_ptr.vmem [resolvable:$true] %s419_s3 }
  0x2c   :  { %475 = vmatprep.subr.bf16.mxu0 %v474_v6  ;;  %461 = vmatpush3.msra.mxu1 %v49_v5  ;;  %s545_s21 = scalar_lea.vmem %s420_s3, 32  ;;  %p550_p3 = scmp.lt.s32.totalorder %s420_s3, %s420_s3 }
  0x2d   :  { %465 = vmatprep.subr.mxu1 %v602_v46  ;;  %462 = vmatprep.mubr.msk.f32.mxu1 %vm603_vm3, %v602_v46  ;;  %p546_p2 = scmp.ne.s32.totalorder %s420_s3, %s545_s21  ;;  %p551_p4 = scmp.lt.s32.totalorder %s545_s21, %s545_s21 }
  0x2f   :  { %477 = vmatpush3.bf16.msra.mxu0 %v474_v6  ;;  %p552_p5 = por %p551_p4, %p550_p3 }
  0x31   :  { %p553_p6 = pnand %p552_p5, %p546_p2 }
  0x32   :  { %458 = vmatmul.mubr.msk.f32.vlgmr.msra.gmra.mrb[0].mxu0 %vm62_vm0, %v660_v7 }
 0x105   :  { %v459_v9 = vpop.f32.mrb[0].mxu0 }
 0x106   :  { %v135_v10 = vpop.f32.mrb[1].mxu0  ;;  %v141_v11 = vadd.f32 %v459_v9, %v433_v8 }
 0x107   :  { %v136_v12 = vadd.f32 %v433_v8, %v135_v10 }
 0x109   :  { %489 = vtanh.f32 %v136_v12 }
 0x10a   :  { %491 = vtanh.f32 %v141_v11 }
 0x113   :  { %v490_v14 = vpop.eup %489 }
 0x114   :  { %v153_v15 = vmul.f32 %v490_v14, %v436_v13  ;;  %v492_v16 = vpop.eup %491 }
 0x115   :  { %v154_v17 = vmul.f32 %v492_v16, %v436_v13 }
 0x116   :  { %155 = vadd.xlane.f32.xlu0 %v153_v15 }
 0x11a   :  { %157 = vadd.xlane.f32.xlu0 %v154_v17 }
 0x1a3   :  { %v156_v21 = vpop.xlane.xlu0 %155 }
 0x1a4   :  { %v166_v24 = vrot.slane %v156_v21, %v165_v22 }
 0x1a7   :  { %v158_v23 = vpop.xlane.xlu0 %157 }
 0x1a8   :  { %v170_v25 = vrot.slane %v158_v23, %v165_v22 }
 0x1aa   :  { %v172_v26 = vsel %vm171_vm1, %v170_v25, %v166_v24 }
 0x1ab   :  { %v175_v27 = vsel %vm174_vm2, %v172_v26, -inf }
 0x1ac   :  { %176 = vmax.xlane.f32.xlu1 %v175_v27 }
 0x239   :  { %v177_v31 = vpop.xlane.xlu1 %176 }
 0x23a   :  { %v182_v32 = vrot.slane %v177_v31, %v181_v29  ;;  %v186_v33 = vrot.slane %v177_v31, %v185_v30 }
 0x23c   :  { %v189_v34 = vsub.f32 %v156_v21, %v182_v32  ;;  %v190_v35 = vsub.f32 %v158_v23, %v186_v33 }
 0x23e   :  { %v191_v36 = vmul.f32 1.442695, %v189_v34  ;;  %v193_v37 = vmul.f32 1.442695, %v190_v35 }
 0x240   :  { %493 = vpow2.f32 %v191_v36 }
 0x241   :  { %495 = vpow2.f32 %v193_v37 }
 0x24a   :  { %v494_v38 = vpop.eup %493 }
 0x24b   :  { %v496_v39 = vpop.eup %495  ;;  %198 = vperm.xlu1 %487, %v494_v38  }
 0x24c   :  { %201 = vperm.xlu0 %488, %v496_v39  }
 0x2ca   :  { %v199_v40 = vpop.permute.xlu1 %198 }
 0x2cb   :  { %v202_v41 = vpop.permute.xlu0 %201  ;;  %v206_v42 = vrot.slane %v199_v40, %v165_v22 }
 0x2cc   :  { %v210_v43 = vrot.slane %v202_v41, %v165_v22 }
 0x2ce   :  { %v211_v44 = vsel %vm171_vm1, %v210_v43, %v206_v42 }
 0x2cf   :  { %v213_v45 = vsel %vm174_vm2, %v211_v44, 0.0 }
 0x2d0   :  { %214 = vadd.xlane.f32.xlu1 %v213_v45 }
 0x35d   :  { %v215_v47 = vpop.xlane.xlu1 %214 }
 0x35e   :  { %v220_v48 = vrot.slane %v215_v47, %v181_v29  ;;  %v224_v49 = vrot.slane %v215_v47, %v185_v30 }
 0x360   :  { %497 = vrcp.f32 %v220_v48 }
 0x361   :  { %499 = vrcp.f32 %v224_v49 }
 0x36a   :  { %v498_v50 = vpop.eup %497 }
 0x36b   :  { %v228_v51 = vmul.f32 %v498_v50, %v494_v38  ;;  %v500_v52 = vpop.eup %499 }
 0x36c   :  { %v230_v53 = vmul.f32 %v500_v52, %v496_v39 }
 0x36d   :  { %233 = vperm.xlu0 %488, %v228_v51  }
 0x371   :  { %314 = vperm.xlu0 %488, %v230_v53  }
 0x3ec   :  { %v234_v54 = vpop.permute.xlu0 %233 }
 0x3ed   :  { %v238_v55 = vrot.slane %v234_v54, %v165_v22 }
 0x3ef   :  { %463 = vmatmul.mubr.msk.f32.vlgmr.msra.gmra.mrb[0].mxu1 %vm239_vm4, %v238_v55 }
 0x3f0   :  { %466 = vmatpush3.msra.mxu1 %v660_v7  ;;  %v315_v56 = vpop.permute.xlu0 %314  ;;  %467 = vmatprep.mubr.msk.f32.mxu1 %vm603_vm3, %v602_v46 }
 0x3f1   :  { %v319_v57 = vrot.slane %v315_v56, %v165_v22 }
 0x3f3   :  { %468 = vmatmul.mubr.msk.f32.vlgmr.msra.gmra.mrb[2].mxu1 %vm239_vm4, %v319_v57  ;;  %v399_v58 = vsel %vm171_vm1, %v319_v57, %v238_v55 }
 0x3f4   :  { %v401_v59 = vsel %vm239_vm4, %v399_v58, 0.0 }
 0x3f5   :  { %402 = vst [vmem:[#allocation8] sm:$0x3] %v401_v59 }
 0x3f6   :  { %556 = shalt.err (!%p553_p6)
}
 0x3f7   :  { %s557_s24 = scalar_lea.hbm %s705_s5, 32 }
 0x3f8   :  { %p558_p7 = scmp.ne.s32.totalorder %s705_s5, %s557_s24  ;;  %p561_p8 = scmp.lt.u32.totalorder %s557_s24, %s705_s5 }
 0x3fa   :  { %p563_p9 = pnand %p561_p8, %p558_p7 }
 0x3fc   :  { %566 = shalt.err (!%p563_p9)
}
 0x3fd   :  { %422 = dma.vmem_to_hbm [thread:$0]  %s420_s3, 32, %s705_s5, [#allocation9]   ;;  %vm397_vm5 = vcmask 254976  }
 0x3fe   :  { %s605_s6 = smov [#allocation7]  }
 0x3ff   :  { %s409_s7 = sshll.u32 %s605_s6, 4  ;;  %s410_s7 = int_to_ptr.vmem [resolvable:$true] %s409_s7 }
 0x400   :  { %s567_s8 = scalar_lea.vmem %s410_s7, 32  ;;  %p572_p11 = scmp.lt.s32.totalorder %s410_s7, %s410_s7 }
 0x401   :  { %p568_p10 = scmp.ne.s32.totalorder %s410_s7, %s567_s8  ;;  %p573_p12 = scmp.lt.s32.totalorder %s567_s8, %s567_s8 }
 0x403   :  { %p574_p13 = por %p573_p12, %p572_p11 }
 0x405   :  { %p575_p0 = pnand %p574_p13, %p568_p10 }
 0x4c2   :  { %v308_v60 = vpop.f32.mrb[0].mxu1 }
 0x4c3   :  { %v464_v61 = vpop.f32.mrb[1].mxu1 }
 0x4c6   :  { %v388_v62 = vpop.f32.mrb[2].mxu1 }
 0x4c7   :  { %v394_v63 = vrot.slane %v388_v62, 7  ;;  %v469_v0 = vpop.f32.mrb[3].mxu1 }
 0x4c9   :  { %v395_v1 = vsel %vm171_vm1, %v394_v63, %v308_v60 }
 0x4ca   :  { %398 = vst.msk [vmem:[#allocation7] sm:$0x3] %vm397_vm5, %v395_v1 }
 0x4cb   :  { %578 = shalt.err (!%p575_p0)
}
 0x4cc   :  { %s579_s10 = scalar_lea.hbm %s704_s4, 32 }
 0x4cd   :  { %p580_p1 = scmp.ne.s32.totalorder %s704_s4, %s579_s10  ;;  %p583_p2 = scmp.lt.u32.totalorder %s579_s10, %s704_s4 }
 0x4cf   :  { %p585_p3 = pnand %p583_p2, %p580_p1 }
 0x4d1   :  { %588 = shalt.err (!%p585_p3)
}
 0x4d2   :  { %412 = dma.vmem_to_hbm [thread:$0]  %s410_s7, 32, %s704_s4, [#allocation4]  }
 0x4d3   :  { %593 = dma.done.wait [#allocation4], 32  }
 0x4d4   :  { %594 = vsyncadd [#allocation4], 4294967264 }
 0x4d5   :  { %595 = dma.done.wait [#allocation9], 32  }
 0x4d6   :  { %596 = vsyncadd [#allocation9], 4294967264 }
 0x4d7   :  { %429 = vsyncpa [#allocation3], 1 }
 0x4d8   :  { %430 = vsyncpa [#allocation6], 1 }
 0x4d9   :  { %431 = vsyncpa [#allocation4], 1 }
 0x4da   :  { %432 = vsyncpa [#allocation9], 1 }

</bundles_post_ra>
